<compile_context>
chip_gen: v5e
topology: v5e:2x2
jax: 0.10.0
libtpu: 0.0.40
codegen_flags: <defaults>
</compile_context>

<pallas_src>
import jax
import jax.numpy as jnp
from jax.experimental import pallas as pl
from jax.experimental.pallas import tpu as pltpu

DROPOUT = 0.2
N_EMBD = 16
LANE = 128      # vreg lane width (VMEM layout pads to this; HBM does not)
SUBLANE = 8     # vreg sublane count: token-tile must be a multiple of this
TARGET_TILES = 4  # keep >= 4 grid steps so v7x megacore + pipelining both engage


def _round_up(x, m):
    return (x + m - 1) // m * m


def ffn_kernel(x_ref, w1_ref, b1_ref, w2_ref, b2_ref, o_ref):
    # Fused Linear -> ReLU -> Linear for one token tile, everything in VMEM.
    x = x_ref[...].astype(w1_ref.dtype)                               # in-kernel cast (free VPU filler)
    h = jnp.dot(x, w1_ref[...], preferred_element_type=jnp.float32)  # [TM, hid] f32 acc
    h = jnp.maximum(h + b1_ref[...], 0.0)                            # f32 bias + ReLU
    h = h.astype(w2_ref.dtype)                                       # narrow for 2nd MXU pass
    y = jnp.dot(h, w2_ref[...], preferred_element_type=jnp.float32)  # [TM, n] f32 acc
    y = y + b2_ref[...]
    # Eval-mode dropout == identity.
    o_ref[...] = y.astype(o_ref.dtype)


def prepare_params(w1, b1, w2, b2, compute_dtype=jnp.bfloat16):
    """One-time prep OUTSIDE the per-call path: transpose PyTorch [out, in]
    weights to [in, out] and cast to compute_dtype (bf16 recommended on all of
    v5e/v6e/v7x: the MXU takes bf16 natively and the epilogue stays f32).
    Biases stay float32 (added to the f32 accumulator). No lane padding."""
    w1_t = jnp.asarray(w1).T.astype(compute_dtype)                 # [n, hid]
    w2_t = jnp.asarray(w2).T.astype(compute_dtype)                 # [hid, n]
    b1_p = jnp.asarray(b1).reshape(1, -1).astype(jnp.float32)      # [1, hid]
    b2_p = jnp.asarray(b2).reshape(1, -1).astype(jnp.float32)      # [1, n]
    return w1_t, b1_p, w2_t, b2_p


def _vmem_budget_bytes():
    """~75% of physical VMEM: ~48 MiB on v7x (64 MiB phys), ~96 MiB on v5e/v6e."""
    try:
        cap = pltpu.get_tpu_info().vmem_capacity_bytes
    except Exception:
        cap = 64 * 1024 * 1024
    return int(cap * 3 // 4)


def _vmem_estimate(tm, n, hid, x_itemsize, w_itemsize):
    # Conservative: VMEM tiles pad the lane dim to 128.
    n_l = _round_up(n, LANE)
    hid_l = _round_up(hid, LANE)
    io = 2 * tm * n_l * x_itemsize + 2 * tm * n_l * 4       # double-buffered x / out tiles
    wts = (n_l * hid_l + hid_l * n_l) * w_itemsize + (hid_l + n_l) * 4  # resident weights + biases
    inter = tm * hid_l * 4 + tm * n_l * 4                   # f32 intermediates in the body
    return io + wts + inter


def feed_forward(x, params, *, tm_max=1024):
    """x: [..., n_embd]; params from prepare_params()."""
    w1_t, b1_p, w2_t, b2_p = params
    orig_shape = x.shape
    n = orig_shape[-1]
    hid = w1_t.shape[1]
    w_itemsize = jnp.dtype(w1_t.dtype).itemsize
    x_itemsize = jnp.dtype(x.dtype).itemsize

    x2d = x.reshape(-1, n)
    M = x2d.shape[0]

    # Token-tile size: multiple of 8 (sublane); big (roofline knee ~512-1024)
    # but capped so the grid keeps >= TARGET_TILES steps when M allows
    # (v7x megacore sharding + per-core double buffering).
    tm = min(tm_max, max(SUBLANE, (M // TARGET_TILES) // SUBLANE * SUBLANE))
    tm = max(SUBLANE, _round_up(min(tm, _round_up(M, SUBLANE)), SUBLANE))
    budget = _vmem_budget_bytes()
    while tm > SUBLANE and _vmem_estimate(tm, n, hid, x_itemsize, w_itemsize) > budget:
        tm = max(SUBLANE, _round_up(tm // 2, SUBLANE))   # stays a multiple of 8

    M_pad = _round_up(M, tm)
    grid = (M_pad // tm,)

    # Only row-pad (to a tile multiple) when needed; no feature/lane padding.
    if M_pad != M:
        x2d = jnp.pad(x2d, ((0, M_pad - M), (0, 0)))

    vmem_limit = int(min(max(2 * _vmem_estimate(tm, n, hid, x_itemsize, w_itemsize),
                             16 * 1024 * 1024),
                         budget))

    out2d = pl.pallas_call(
        ffn_kernel,
        out_shape=jax.ShapeDtypeStruct((M_pad, n), x.dtype),
        grid=grid,
        in_specs=[
            pl.BlockSpec((tm, n), lambda i: (i, 0)),      # x tile: pipelined over tokens
            pl.BlockSpec((n, hid), lambda i: (0, 0)),     # weights: VMEM-resident (constant map)
            pl.BlockSpec((1, hid), lambda i: (0, 0)),
            pl.BlockSpec((hid, n), lambda i: (0, 0)),
            pl.BlockSpec((1, n), lambda i: (0, 0)),
        ],
        out_specs=pl.BlockSpec((tm, n), lambda i: (i, 0)),
        compiler_params=pltpu.CompilerParams(
            dimension_semantics=("parallel",),   # shard row tiles across TCs (v7x megacore)
            vmem_limit_bytes=vmem_limit),
    )(x2d, w1_t, b1_p, w2_t, b2_p)

    if M_pad != M:
        out2d = out2d[:M]
    return out2d.reshape(orig_shape)


def init_params(key, n_embd):
    """Deterministic init mimicking PyTorch nn.Linear defaults (U[-1/sqrt(fan_in), 1/sqrt(fan_in)])."""
    k1, k2, k3, k4 = jax.random.split(key, 4)
    hidden = 4 * n_embd
    lim1 = 1.0 / jnp.sqrt(n_embd)
    lim2 = 1.0 / jnp.sqrt(hidden)
    w1 = jax.random.uniform(k1, (hidden, n_embd), jnp.float32, -lim1, lim1)
    b1 = jax.random.uniform(k2, (hidden,), jnp.float32, -lim1, lim1)
    w2 = jax.random.uniform(k3, (n_embd, hidden), jnp.float32, -lim2, lim2)
    b2 = jax.random.uniform(k4, (n_embd,), jnp.float32, -lim2, lim2)
    return w1, b1, w2, b2


if __name__ == "__main__":
    key = jax.random.PRNGKey(0)
    k_param, k_x = jax.random.split(key)

    w1, b1, w2, b2 = init_params(k_param, N_EMBD)

    # Small transformer-like input: (batch=4, seq=128, n_embd=16) -> M=512 tokens,
    # giving TM=128 and a grid of (4,) pipelined / megacore-shardable steps.
    x = jax.random.normal(k_x, (4, 128, N_EMBD), jnp.float32)

    # Plain JAX reference (eval-mode dropout = identity).
    ref = jnp.maximum(x @ w1.T + b1, 0.0) @ w2.T + b2

    # Float32 weight path: exact parity check.
    params_f32 = prepare_params(w1, b1, w2, b2, compute_dtype=jnp.float32)
    out = jax.block_until_ready(feed_forward(x, params_f32))
    assert out.shape == x.shape
    assert jnp.allclose(out, ref, atol=1e-5, rtol=1e-5)

    # bf16 matmul-input path (recommended on v5e/v6e/v7x), f32 accumulation.
    # Note: activations are also quantized to bf16 before the first matmul, so
    # the error vs the f32 reference includes input quantization.
    params_bf16 = prepare_params(w1, b1, w2, b2, compute_dtype=jnp.bfloat16)
    out_bf16 = jax.block_until_ready(feed_forward(x, params_bf16))
    assert out_bf16.shape == x.shape
    assert jnp.allclose(out_bf16, ref, atol=5e-2, rtol=5e-2)

    print("KERNEL_OK")
</pallas_src>

<mosaic_0001>
module attributes {stable_mosaic.version = 11 : i64} {
  func.func @ffn_kernel(%arg0: i32, %arg1: memref<128x16xf32, #tpu.memory_space<vmem>>, %arg2: memref<16x64xf32, #tpu.memory_space<vmem>>, %arg3: memref<1x64xf32, #tpu.memory_space<vmem>>, %arg4: memref<64x16xf32, #tpu.memory_space<vmem>>, %arg5: memref<1x16xf32, #tpu.memory_space<vmem>>, %arg6: memref<128x16xf32, #tpu.memory_space<vmem>>) attributes {dimension_semantics = [#tpu.dimension_semantics<parallel>], iteration_bounds = array<i64: 4>, scalar_prefetch = 0 : i64, scratch_operands = 0 : i64, tpu.core_type = #tpu.core_type<tc>, window_params = [{transform_indices = @transform_0, window_bounds = array<i64: 128, 16>}, {pipeline_mode = #tpu.pipeline_mode<synchronous>, transform_indices = @transform_1, window_bounds = array<i64: 16, 64>}, {pipeline_mode = #tpu.pipeline_mode<synchronous>, transform_indices = @transform_2, window_bounds = array<i64: 1, 64>}, {pipeline_mode = #tpu.pipeline_mode<synchronous>, transform_indices = @transform_3, window_bounds = array<i64: 64, 16>}, {pipeline_mode = #tpu.pipeline_mode<synchronous>, transform_indices = @transform_4, window_bounds = array<i64: 1, 16>}, {transform_indices = @transform_5, window_bounds = array<i64: 128, 16>}]} {
    %c0 = arith.constant 0 : index
    %c0_0 = arith.constant 0 : index
    %0 = vector.load %arg1[%c0, %c0_0] : memref<128x16xf32, #tpu.memory_space<vmem>>, vector<128x16xf32>
    %c0_1 = arith.constant 0 : index
    %c0_2 = arith.constant 0 : index
    %1 = vector.load %arg2[%c0_1, %c0_2] : memref<16x64xf32, #tpu.memory_space<vmem>>, vector<16x64xf32>
    %cst = arith.constant dense<0.000000e+00> : vector<128x64xf32>
    %2 = tpu.matmul %0, %1, %cst {dimension_numbers = #tpu.dot_dimension_numbers<[1], [0], [0], [1], [0, 0, 1, 1], [], []>} : vector<128x16xf32>, vector<16x64xf32>, vector<128x64xf32> -> vector<128x64xf32>
    %c0_3 = arith.constant 0 : index
    %c0_4 = arith.constant 0 : index
    %3 = vector.load %arg3[%c0_3, %c0_4] : memref<1x64xf32, #tpu.memory_space<vmem>>, vector<1x64xf32>
    %4 = vector.broadcast %3 : vector<1x64xf32> to vector<128x64xf32>
    %5 = arith.addf %2, %4 : vector<128x64xf32>
    %cst_5 = arith.constant 0.000000e+00 : f32
    %6 = vector.broadcast %cst_5 : f32 to vector<128x64xf32>
    %7 = arith.maximumf %5, %6 : vector<128x64xf32>
    %c0_6 = arith.constant 0 : index
    %c0_7 = arith.constant 0 : index
    %8 = vector.load %arg4[%c0_6, %c0_7] : memref<64x16xf32, #tpu.memory_space<vmem>>, vector<64x16xf32>
    %cst_8 = arith.constant dense<0.000000e+00> : vector<128x16xf32>
    %9 = tpu.matmul %7, %8, %cst_8 {dimension_numbers = #tpu.dot_dimension_numbers<[1], [0], [0], [1], [0, 0, 1, 1], [], []>} : vector<128x64xf32>, vector<64x16xf32>, vector<128x16xf32> -> vector<128x16xf32>
    %c0_9 = arith.constant 0 : index
    %c0_10 = arith.constant 0 : index
    %10 = vector.load %arg5[%c0_9, %c0_10] : memref<1x16xf32, #tpu.memory_space<vmem>>, vector<1x16xf32>
    %11 = vector.broadcast %10 : vector<1x16xf32> to vector<128x16xf32>
    %12 = arith.addf %9, %11 : vector<128x16xf32>
    %c0_11 = arith.constant 0 : index
    %c0_12 = arith.constant 0 : index
    %13 = vector.load %arg6[%c0_11, %c0_12] : memref<128x16xf32, #tpu.memory_space<vmem>>, vector<128x16xf32>
    tpu.vector_store %arg6[%c0_11, %c0_12], %12 {strides = array<i32>} : memref<128x16xf32, #tpu.memory_space<vmem>>, vector<128x16xf32>,
    return
  }
  func.func @transform_0(%arg0: i32) -> (i32, i32) {
    %c0_i32 = arith.constant 0 : i32
    %c0_i32_0 = arith.constant 0 : i32
    return %arg0, %c0_i32 : i32, i32
  }
  func.func @transform_1(%arg0: i32) -> (i32, i32) {
    %c0_i32 = arith.constant 0 : i32
    %c0_i32_0 = arith.constant 0 : i32
    %c0_i32_1 = arith.constant 0 : i32
    return %c0_i32, %c0_i32_0 : i32, i32
  }
  func.func @transform_2(%arg0: i32) -> (i32, i32) {
    %c0_i32 = arith.constant 0 : i32
    %c0_i32_0 = arith.constant 0 : i32
    %c0_i32_1 = arith.constant 0 : i32
    return %c0_i32, %c0_i32_0 : i32, i32
  }
  func.func @transform_3(%arg0: i32) -> (i32, i32) {
    %c0_i32 = arith.constant 0 : i32
    %c0_i32_0 = arith.constant 0 : i32
    %c0_i32_1 = arith.constant 0 : i32
    return %c0_i32, %c0_i32_0 : i32, i32
  }
  func.func @transform_4(%arg0: i32) -> (i32, i32) {
    %c0_i32 = arith.constant 0 : i32
    %c0_i32_0 = arith.constant 0 : i32
    %c0_i32_1 = arith.constant 0 : i32
    return %c0_i32, %c0_i32_0 : i32, i32
  }
  func.func @transform_5(%arg0: i32) -> (i32, i32) {
    %c0_i32 = arith.constant 0 : i32
    %c0_i32_0 = arith.constant 0 : i32
    return %arg0, %c0_i32 : i32, i32
  }
}

</mosaic_0001>

<bundles_post_ra>
// kernel: tpu_custom_call.1
= control target key start
LH: loop header
LB: loop body
LE: loop exit
PB: predicated region body
PF: predicated region fallthrough
CT: control target
= control target key end

     0   :  { %s679_s18 = smov 0   ;;  %s841_s0 = inlined_call_operand.vmem [shape: f32[512,16], index: 0, kind: input, shape index: {}]   ;;  %s842_s1 = inlined_call_operand.vmem [shape: f32[16,64], index: 1, kind: input, shape index: {}]   ;;  %s843_s2 = inlined_call_operand.vmem [shape: f32[1,64], index: 2, kind: input, shape index: {}]   ;;  %s844_s3 = inlined_call_operand.vmem [shape: f32[64,16], index: 3, kind: input, shape index: {}]   ;;  %s845_s4 = inlined_call_operand.vmem [shape: f32[1,16], index: 4, kind: input, shape index: {}]   ;;  %s846_s5 = inlined_call_operand.vmem [shape: f32[512,16], index: 5, kind: output, shape index: {}]  }
   0x1 LB: > { %s578_s19 = sadd.s32 4294967295, %s647_s18   ;;  %p582_p0 = scmp.ge.s32.totalorder %s647_s18, 1  ;;  %s647_s18 = sphi %s679_s18, %s15_s18  }
   0x2   : > { %p188_p1 = scmp.lt.s32.totalorder %s647_s18, 5 }
   0x4   : > { %p189_p2 = pnand %p582_p0, %p188_p1 }
   0x5   : > { %s583_s24 = sshll.u32 (!%p189_p2), %s578_s19, 4 }
   0x6   : > { %192 = sbr.rel (%p189_p2) target bundleno = 400 (0x190), region = 40  ;;  %p217_p3 = scmp.lt.s32.totalorder (!%p189_p2), %s583_s24, 63 }
   0xb   : > { %v245_v0 = vld [vmem:[%s842_s1 + $0x8] sm:$0xff]  ;;  %v244_v1 = vld [vmem:[%s842_s1] sm:$0xff]  ;;  %s848_s24 = smov (!%p217_p3, %s583_s24), 63  ;;  %vm250_vm0 = vcmask 130048   ;;  %v387_v12 = vld [vmem:[%s844_s3 + $0x38] sm:$0xff]  ;;  %vm392_vm1 = vcmask 523264  }
   0xc   : > { %313 = vmatpush.msra.mxu0 %v245_v0  ;;  %621 = vmatpush.msra.mxu3 %v245_v0  ;;  %s584_s25 = sshll.u32 %s848_s24, 3  ;;  %v386_v13 = vld [vmem:[%s844_s3 + $0x30] sm:$0xff]  ;;  %v385_v14 = vld [vmem:[%s844_s3 + $0x28] sm:$0xff]  ;;  %v384_v16 = vld [vmem:[%s844_s3 + $0x20] sm:$0xff] }
   0xd   : > { %s701_s28 = scalar_lea.vmem %s841_s0, %s584_s25  ;;  %449 = vmatpush.msra.mxu1 %v387_v12  ;;  %623 = vmatpush.msra.mxu2 %v387_v12  ;;  %v383_v18 = vld [vmem:[%s844_s3 + $0x18] sm:$0xff]  ;;  %v382_v23 = vld [vmem:[%s844_s3 + $0x10] sm:$0xff]  ;;  %v381_v24 = vld [vmem:[%s844_s3 + $0x8] sm:$0xff]  ;;  %s804_s29 = scalar_lea.vmem %s846_s5, %s584_s25 }
   0xe   : > { %314 = vmatpush.msra.mxu0 %v244_v1  ;;  %622 = vmatpush.msra.mxu3 %v244_v1  ;;  %v228_v2 = vld [vmem:[%s701_s28] sm:$0xff]  ;;  %v229_v3 = vld [vmem:[%s701_s28 + $0x8] sm:$0xff]  ;;  %v230_v4 = vld [vmem:[%s701_s28 + $0x10] sm:$0xff] }
   0xf   : > { %587 = vmatmul.msk.f32.vlgmr.msra.gmra.mxu0 %vm250_vm0, %v228_v2  ;;  %v231_v5 = vld [vmem:[%s701_s28 + $0x18] sm:$0xff]  ;;  %v232_v6 = vld [vmem:[%s701_s28 + $0x20] sm:$0xff]  ;;  %v237_v7 = vld [vmem:[%s701_s28 + $0x48] sm:$0xff]  ;;  %450 = vmatpush.msra.mxu1 %v386_v13 }
  0x10   : > { %596 = vmatmul.msk.f32.vlgmr.msra.gmra.mxu3 %vm250_vm0, %v237_v7  ;;  %v233_v8 = vld [vmem:[%s701_s28 + $0x28] sm:$0xff]  ;;  %v238_v9 = vld [vmem:[%s701_s28 + $0x50] sm:$0xff]  ;;  %v239_v11 = vld [vmem:[%s701_s28 + $0x58] sm:$0xff]  ;;  %624 = vmatpush.msra.mxu2 %v386_v13 }
  0x11   : > { %v234_v10 = vld [vmem:[%s701_s28 + $0x30] sm:$0xff]  ;;  %v235_v15 = vld [vmem:[%s701_s28 + $0x38] sm:$0xff]  ;;  %v240_v17 = vld [vmem:[%s701_s28 + $0x60] sm:$0xff]  ;;  %451 = vmatpush.msra.mxu1 %v385_v14 }
  0x12   : > { %625 = vmatpush.msra.mxu2 %v385_v14  ;;  %v236_v19 = vld [vmem:[%s701_s28 + $0x40] sm:$0xff]  ;;  %v241_v20 = vld [vmem:[%s701_s28 + $0x68] sm:$0xff]  ;;  %v242_v21 = vld [vmem:[%s701_s28 + $0x70] sm:$0xff] }
  0x13   : > { %452 = vmatpush.msra.mxu1 %v384_v16  ;;  %v243_v22 = vld [vmem:[%s701_s28 + $0x78] sm:$0xff]  ;;  %v380_v25 = vld [vmem:[%s844_s3] sm:$0xff] }
  0x14   : > { %626 = vmatpush.msra.mxu2 %v384_v16  ;;  %v762_v26 = vld [vmem:[%s843_s2] ss:$0 sm:$0xff] }
  0x15   : > { %453 = vmatpush.msra.mxu1 %v383_v18 }
  0x16   : > { %627 = vmatpush.msra.mxu2 %v383_v18 }
  0x17   : > { %588 = vmatmul.msk.f32.gmra.mxu0 %vm250_vm0, %v229_v3  ;;  %454 = vmatpush.msra.mxu1 %v382_v23 }
  0x18   : > { %597 = vmatmul.msk.f32.gmra.mxu3 %vm250_vm0, %v238_v9  ;;  %628 = vmatpush.msra.mxu2 %v382_v23 }
  0x19   : > { %455 = vmatpush.msra.mxu1 %v381_v24 }
  0x1a   : > { %629 = vmatpush.msra.mxu2 %v381_v24 }
  0x1b   : > { %456 = vmatpush.msra.mxu1 %v380_v25 }
  0x1c   : > { %630 = vmatpush.msra.mxu2 %v380_v25 }
  0x1f   : > { %589 = vmatmul.msk.f32.gmra.mxu0 %vm250_vm0, %v230_v4 }
  0x20   : > { %598 = vmatmul.msk.f32.gmra.mxu3 %vm250_vm0, %v239_v11  ;;  %v640_v11 = vld [vmem:[%s845_s4] ss:$0 sm:$0xff] }
  0x27   : > { %590 = vmatmul.msk.f32.gmra.mxu0 %vm250_vm0, %v231_v5 }
  0x28   : > { %599 = vmatmul.msk.f32.gmra.mxu3 %vm250_vm0, %v240_v17 }
  0x2f   : > { %591 = vmatmul.msk.f32.gmra.mxu0 %vm250_vm0, %v232_v6 }
  0x30   : > { %600 = vmatmul.msk.f32.gmra.mxu3 %vm250_vm0, %v241_v20 }
  0x37   : > { %592 = vmatmul.msk.f32.gmra.mxu0 %vm250_vm0, %v233_v8 }
  0x38   : > { %601 = vmatmul.msk.f32.gmra.mxu3 %vm250_vm0, %v242_v21 }
  0x3f   : > { %593 = vmatmul.msk.f32.gmra.mxu0 %vm250_vm0, %v234_v10 }
  0x40   : > { %602 = vmatmul.msk.f32.gmra.mxu3 %vm250_vm0, %v243_v22 }
  0x47   : > { %594 = vmatmul.msk.f32.gmra.mxu0 %vm250_vm0, %v235_v15 }
  0x4f   : > { %595 = vmatmul.msk.f32.gmra.mxu0 %vm250_vm0, %v236_v19 }
  0x8c   : > { %v316_v27 = vpop.f32.mrf.mxu0 }
  0x8d   : > { %v317_v28 = vadd.f32 %v762_v26, %v316_v27 }
  0x8f   : > { %v364_v29 = vmax.f32 %v317_v28, 0.0 }
  0x91   : > { %603 = vmatmul.msk.f32.vlgmr.msra.gmra.mxu1 %vm392_vm1, %v364_v29 }
  0x93   : > { %v343_v48 = vpop.f32.mrf.mxu3 }
  0x94   : > { %v319_v30 = vpop.f32.mrf.mxu0  ;;  %v344_v56 = vadd.f32 %v762_v26, %v343_v48 }
  0x95   : > { %v320_v31 = vadd.f32 %v762_v26, %v319_v30 }
  0x96   : > { %v373_v57 = vmax.f32 %v344_v56, 0.0 }
  0x97   : > { %v365_v32 = vmax.f32 %v320_v31, 0.0 }
  0x99   : > { %604 = vmatmul.msk.f32.gmra.mxu1 %vm392_vm1, %v365_v32 }
  0x9b   : > { %v346_v53 = vpop.f32.mrf.mxu3 }
  0x9c   : > { %v322_v33 = vpop.f32.mrf.mxu0  ;;  %v347_v59 = vadd.f32 %v762_v26, %v346_v53 }
  0x9d   : > { %v323_v34 = vadd.f32 %v762_v26, %v322_v33 }
  0x9e   : > { %v374_v60 = vmax.f32 %v347_v59, 0.0 }
  0x9f   : > { %v366_v35 = vmax.f32 %v323_v34, 0.0 }
  0xa1   : > { %605 = vmatmul.msk.f32.gmra.mxu1 %vm392_vm1, %v366_v35 }
  0xa3   : > { %v349_v58 = vpop.f32.mrf.mxu3 }
  0xa4   : > { %v325_v36 = vpop.f32.mrf.mxu0  ;;  %v350_v62 = vadd.f32 %v762_v26, %v349_v58 }
  0xa5   : > { %v326_v37 = vadd.f32 %v762_v26, %v325_v36 }
  0xa6   : > { %v375_v63 = vmax.f32 %v350_v62, 0.0 }
  0xa7   : > { %v367_v38 = vmax.f32 %v326_v37, 0.0 }
  0xa9   : > { %606 = vmatmul.msk.f32.gmra.mxu1 %vm392_vm1, %v367_v38 }
  0xab   : > { %v352_v61 = vpop.f32.mrf.mxu3 }
  0xac   : > { %v328_v39 = vpop.f32.mrf.mxu0  ;;  %v353_v0 = vadd.f32 %v762_v26, %v352_v61 }
  0xad   : > { %v329_v40 = vadd.f32 %v762_v26, %v328_v39 }
  0xae   : > { %v376_v2 = vmax.f32 %v353_v0, 0.0 }
  0xaf   : > { %v368_v41 = vmax.f32 %v329_v40, 0.0 }
  0xb1   : > { %607 = vmatmul.msk.f32.gmra.mxu1 %vm392_vm1, %v368_v41 }
  0xb3   : > { %v355_v1 = vpop.f32.mrf.mxu3 }
  0xb4   : > { %v331_v42 = vpop.f32.mrf.mxu0  ;;  %v356_v3 = vadd.f32 %v762_v26, %v355_v1 }
  0xb5   : > { %v332_v43 = vadd.f32 %v762_v26, %v331_v42 }
  0xb6   : > { %v377_v5 = vmax.f32 %v356_v3, 0.0 }
  0xb7   : > { %v369_v44 = vmax.f32 %v332_v43, 0.0 }
  0xb9   : > { %608 = vmatmul.msk.f32.gmra.mxu1 %vm392_vm1, %v369_v44 }
  0xbb   : > { %v358_v4 = vpop.f32.mrf.mxu3 }
  0xbc   : > { %v334_v45 = vpop.f32.mrf.mxu0  ;;  %v359_v6 = vadd.f32 %v762_v26, %v358_v4 }
  0xbd   : > { %v335_v46 = vadd.f32 %v762_v26, %v334_v45 }
  0xbe   : > { %v378_v7 = vmax.f32 %v359_v6, 0.0 }
  0xbf   : > { %v370_v47 = vmax.f32 %v335_v46, 0.0 }
  0xc1   : > { %609 = vmatmul.msk.f32.gmra.mxu1 %vm392_vm1, %v370_v47 }
  0xc3   : > { %v361_v8 = vpop.f32.mrf.mxu3 }
  0xc4   : > { %v337_v49 = vpop.f32.mrf.mxu0  ;;  %v362_v9 = vadd.f32 %v762_v26, %v361_v8 }
  0xc5   : > { %v338_v50 = vadd.f32 %v762_v26, %v337_v49 }
  0xc6   : > { %v379_v10 = vmax.f32 %v362_v9, 0.0 }
  0xc7   : > { %v371_v51 = vmax.f32 %v338_v50, 0.0 }
  0xc9   : > { %610 = vmatmul.msk.f32.gmra.mxu1 %vm392_vm1, %v371_v51 }
  0xcc   : > { %v340_v52 = vpop.f32.mrf.mxu0 }
  0xcd   : > { %v341_v54 = vadd.f32 %v762_v26, %v340_v52 }
  0xcf   : > { %v372_v55 = vmax.f32 %v341_v54, 0.0 }
  0xd1   : > { %611 = vmatmul.msk.f32.vlgmr.msra.gmra.mxu2 %vm392_vm1, %v372_v55 }
  0xd9   : > { %612 = vmatmul.msk.f32.gmra.mxu2 %vm392_vm1, %v373_v57 }
  0xe1   : > { %613 = vmatmul.msk.f32.gmra.mxu2 %vm392_vm1, %v374_v60 }
  0xe9   : > { %614 = vmatmul.msk.f32.gmra.mxu2 %vm392_vm1, %v375_v63 }
  0xf1   : > { %615 = vmatmul.msk.f32.gmra.mxu2 %vm392_vm1, %v376_v2 }
  0xf9   : > { %616 = vmatmul.msk.f32.gmra.mxu2 %vm392_vm1, %v377_v5 }
 0x101   : > { %617 = vmatmul.msk.f32.gmra.mxu2 %vm392_vm1, %v378_v7 }
 0x109   : > { %618 = vmatmul.msk.f32.gmra.mxu2 %vm392_vm1, %v379_v10 }
 0x10e   : > { %v458_v12 = vpop.f32.mrf.mxu1 }
 0x10f   : > { %v459_v13 = vadd.f32 %v640_v11, %v458_v12 }
 0x111   : > { %506 = vst.msk [vmem:[%s804_s29] sm:$0xff] %vm250_vm0, %v459_v13 }
 0x116   : > { %v461_v14 = vpop.f32.mrf.mxu1 }
 0x117   : > { %v462_v15 = vadd.f32 %v640_v11, %v461_v14 }
 0x119   : > { %507 = vst.msk [vmem:[%s804_s29 + $0x8] sm:$0xff] %vm250_vm0, %v462_v15 }
 0x11e   : > { %v464_v16 = vpop.f32.mrf.mxu1 }
 0x11f   : > { %v465_v17 = vadd.f32 %v640_v11, %v464_v16 }
 0x121   : > { %508 = vst.msk [vmem:[%s804_s29 + $0x10] sm:$0xff] %vm250_vm0, %v465_v17 }
 0x126   : > { %v467_v18 = vpop.f32.mrf.mxu1 }
 0x127   : > { %v468_v19 = vadd.f32 %v640_v11, %v467_v18 }
 0x129   : > { %509 = vst.msk [vmem:[%s804_s29 + $0x18] sm:$0xff] %vm250_vm0, %v468_v19 }
 0x12e   : > { %v470_v20 = vpop.f32.mrf.mxu1 }
 0x12f   : > { %v471_v21 = vadd.f32 %v640_v11, %v470_v20 }
 0x131   : > { %510 = vst.msk [vmem:[%s804_s29 + $0x20] sm:$0xff] %vm250_vm0, %v471_v21 }
 0x136   : > { %v473_v22 = vpop.f32.mrf.mxu1 }
 0x137   : > { %v474_v23 = vadd.f32 %v640_v11, %v473_v22 }
 0x139   : > { %511 = vst.msk [vmem:[%s804_s29 + $0x28] sm:$0xff] %vm250_vm0, %v474_v23 }
 0x13e   : > { %v476_v24 = vpop.f32.mrf.mxu1 }
 0x13f   : > { %v477_v25 = vadd.f32 %v640_v11, %v476_v24 }
 0x141   : > { %512 = vst.msk [vmem:[%s804_s29 + $0x30] sm:$0xff] %vm250_vm0, %v477_v25 }
 0x146   : > { %v479_v26 = vpop.f32.mrf.mxu1 }
 0x147   : > { %v480_v27 = vadd.f32 %v640_v11, %v479_v26 }
 0x149   : > { %513 = vst.msk [vmem:[%s804_s29 + $0x38] sm:$0xff] %vm250_vm0, %v480_v27 }
 0x154   : > { %v482_v28 = vpop.f32.mrf.mxu2 }
 0x155   : > { %v483_v29 = vadd.f32 %v640_v11, %v482_v28 }
 0x157   : > { %514 = vst.msk [vmem:[%s804_s29 + $0x40] sm:$0xff] %vm250_vm0, %v483_v29 }
 0x15c   : > { %v485_v30 = vpop.f32.mrf.mxu2 }
 0x15d   : > { %v486_v31 = vadd.f32 %v640_v11, %v485_v30 }
 0x15f   : > { %515 = vst.msk [vmem:[%s804_s29 + $0x48] sm:$0xff] %vm250_vm0, %v486_v31 }
 0x164   : > { %v488_v32 = vpop.f32.mrf.mxu2 }
 0x165   : > { %v489_v33 = vadd.f32 %v640_v11, %v488_v32 }
 0x167   : > { %516 = vst.msk [vmem:[%s804_s29 + $0x50] sm:$0xff] %vm250_vm0, %v489_v33 }
 0x16c   : > { %v491_v34 = vpop.f32.mrf.mxu2 }
 0x16d   : > { %v492_v35 = vadd.f32 %v640_v11, %v491_v34 }
 0x16f   : > { %517 = vst.msk [vmem:[%s804_s29 + $0x58] sm:$0xff] %vm250_vm0, %v492_v35 }
 0x174   : > { %v494_v36 = vpop.f32.mrf.mxu2 }
 0x175   : > { %v495_v37 = vadd.f32 %v640_v11, %v494_v36 }
 0x177   : > { %518 = vst.msk [vmem:[%s804_s29 + $0x60] sm:$0xff] %vm250_vm0, %v495_v37 }
 0x17c   : > { %v497_v38 = vpop.f32.mrf.mxu2 }
 0x17d   : > { %v498_v39 = vadd.f32 %v640_v11, %v497_v38 }
 0x17f   : > { %519 = vst.msk [vmem:[%s804_s29 + $0x68] sm:$0xff] %vm250_vm0, %v498_v39 }
 0x184   : > { %v500_v40 = vpop.f32.mrf.mxu2 }
 0x185   : > { %v501_v41 = vadd.f32 %v640_v11, %v500_v40 }
 0x187   : > { %520 = vst.msk [vmem:[%s804_s29 + $0x70] sm:$0xff] %vm250_vm0, %v501_v41 }
 0x18c   : > { %v503_v42 = vpop.f32.mrf.mxu2 }
 0x18d   : > { %v504_v43 = vadd.f32 %v640_v11, %v503_v42 }
 0x18f   : > { %521 = vst.msk [vmem:[%s804_s29 + $0x78] sm:$0xff] %vm250_vm0, %v504_v43 }
 0x190 PF: > { %s15_s18 = sadd.s32 1, %s647_s18  }
 0x191   : > { %p12_p4 = scmp.ge.s32.totalorder %s15_s18, 6  }
 0x193   :  { %14 = sbr.rel (!%p12_p4) target bundleno = 1 (0x1), region = 70 }

</bundles_post_ra>
